<compile_context>
chip_gen: v7x
topology: tpu7x:2x2x1
jax: 0.10.0
libtpu: 0.0.40
codegen_flags: <defaults>
</compile_context>

<pallas_src>
import math
import functools
import jax
import jax.numpy as jnp
from jax.experimental import pallas as pl
from jax.experimental.pallas import tpu as pltpu

BN_EPS = 1e-5
LANE = 128      # lane width
SUB = 8         # sublane width
TM_MAX = 512    # row-tile size once M grows beyond one tile


# ----------------------------- Pallas kernel ------------------------------- #

def _fused_net_kernel(patch_ref, stem_w_ref, stem_b_ref,
                      head_w_ref, head_b_ref,
                      cls_w_ref, cls_b_ref,
                      out_ref, pooled_acc,
                      *, m_rows, hw, tm, n_pad):
    """Fused stem conv + head conv + global-avg-pool + linear.

    patch_ref : (TM, Kp)    bf16  im2col patches (BN scale folded into weights)
    stem_w_ref: (Kp, C0p)   bf16
    stem_b_ref: (1, C0p)    f32   folded BN shift
    head_w_ref: (C0p, CLp)  bf16
    head_b_ref: (1, CLp)    f32   folded BN shift
    cls_w_ref : (CLp, NCp)  f32
    cls_b_ref : (1, NCp)    f32
    out_ref   : (Np, NCp)   f32   logits (resident across the M grid axis)
    pooled_acc: (Np, CLp)   f32   VMEM scratch accumulator
    """
    @pl.when(pl.program_id(0) == 0)
    def _init():
        pooled_acc[...] = jnp.zeros_like(pooled_acc)

    # --- stem: Conv3x3 (im2col matmul, bf16 -> f32 acc) + BN shift + SiLU ---
    y0 = jnp.dot(patch_ref[...], stem_w_ref[...],
                 preferred_element_type=jnp.float32)
    y0 = y0 + stem_b_ref[...]
    h0 = y0 * jax.nn.sigmoid(y0)                     # SiLU kept in f32 (v5e)

    # TODO(synk): zebanas `Cell` stack definition is not provided in the
    # module source; the feature stage is treated as identity
    # (network_channels equal, stride 1).

    # --- head: Conv1x1 + BN shift + SiLU (never leaves VMEM) ---
    y1 = jnp.dot(h0.astype(jnp.bfloat16), head_w_ref[...],
                 preferred_element_type=jnp.float32)
    y1 = y1 + head_b_ref[...]
    h1 = y1 * jax.nn.sigmoid(y1)                     # (TM, CLp) f32

    # --- global average pool: pooling matrix built in-kernel (no HBM input),
    #     partial sums on the MXU (1/HW folded into the pooling weights) ---
    row0 = pl.program_id(0) * tm
    row = jax.lax.broadcasted_iota(jnp.int32, (n_pad, tm), 1) + row0
    batch = jax.lax.broadcasted_iota(jnp.int32, (n_pad, tm), 0)
    lo = batch * hw                                   # first row of each batch
    mask = (row >= lo) & (row < lo + hw) & (row < m_rows)
    pool = jnp.where(mask, jnp.float32(1.0 / hw), jnp.float32(0.0))

    pooled_acc[...] += jnp.dot(pool, h1, preferred_element_type=jnp.float32)

    # --- Dropout (eval: identity) + Linear, only on the last M tile ---
    @pl.when(pl.program_id(0) == pl.num_programs(0) - 1)
    def _finalize():
        logits = jnp.dot(pooled_acc[...], cls_w_ref[...],
                         preferred_element_type=jnp.float32) + cls_b_ref[...]
        out_ref[...] = logits.astype(out_ref.dtype)


# ------------------------------- JAX glue ---------------------------------- #

def _round_up(x, m):
    return ((x + m - 1) // m) * m


def _pad2(a, rows, cols):
    r, c = a.shape
    return jnp.pad(a, ((0, rows - r), (0, cols - c)))


def im2col(x, kh, kw, stride, pad):
    """x: NHWC -> (N*Hout*Wout, kh*kw*C) patch matrix (di, dj, c order)."""
    n, h, w, c = x.shape
    xp = jnp.pad(x, ((0, 0), (pad, pad), (pad, pad), (0, 0)))
    hout = (h + 2 * pad - kh) // stride + 1
    wout = (w + 2 * pad - kw) // stride + 1
    cols = []
    for di in range(kh):
        for dj in range(kw):
            cols.append(
                xp[:, di:di + (hout - 1) * stride + 1:stride,
                      dj:dj + (wout - 1) * stride + 1:stride, :])
    patches = jnp.concatenate(cols, axis=-1)          # (N, Hout, Wout, kh*kw*C)
    return patches.reshape(n * hout * wout, kh * kw * c), hout, wout


def init_params(key, network_channels=(16, 16), strides=(2, 1),
                last_channels=32, num_classes=10):
    """PyTorch-equivalent init (eval-mode BN with fresh running stats)."""
    k_stem, k_head, k_cls = jax.random.split(key, 3)
    c0 = network_channels[0]
    c_feat = network_channels[-1]

    # stem 3x3 conv: kaiming normal, mode='fan_out', no bias (BN follows)
    fan_out = c0 * 3 * 3
    stem_w = jax.random.normal(k_stem, (3 * 3 * 3, c0), jnp.float32) \
        * math.sqrt(2.0 / fan_out)

    # head 1x1 conv
    fan_out = last_channels * 1 * 1
    head_w = jax.random.normal(k_head, (c_feat, last_channels), jnp.float32) \
        * math.sqrt(2.0 / fan_out)

    # BatchNorm eval params (fresh): gamma=1, beta=0, mean=0, var=1
    bn = lambda c: (jnp.ones((c,), jnp.float32), jnp.zeros((c,), jnp.float32),
                    jnp.zeros((c,), jnp.float32), jnp.ones((c,), jnp.float32))
    stem_gamma, stem_beta, stem_mean, stem_var = bn(c0)
    head_gamma, head_beta, head_mean, head_var = bn(last_channels)

    # classifier Linear (module init: uniform(+-1/sqrt(out_features)), bias=0)
    r = 1.0 / math.sqrt(num_classes)
    cls_w = jax.random.uniform(k_cls, (last_channels, num_classes),
                               jnp.float32, -r, r)
    cls_b = jnp.zeros((num_classes,), jnp.float32)

    return dict(stem_w=stem_w, stem_gamma=stem_gamma, stem_beta=stem_beta,
                stem_mean=stem_mean, stem_var=stem_var,
                head_w=head_w, head_gamma=head_gamma, head_beta=head_beta,
                head_mean=head_mean, head_var=head_var,
                cls_w=cls_w, cls_b=cls_b,
                stem_stride=strides[0], num_classes=num_classes)


def prepare_params(p):
    """Fold BN into weights, pad to lane-dense 128 multiples, cast to bf16."""
    k = p['stem_w'].shape[0]
    c0 = p['stem_w'].shape[1]
    cl = p['head_w'].shape[1]
    nc = p['cls_w'].shape[1]

    kp = _round_up(k, LANE)
    c0p = _round_up(c0, LANE)
    clp = _round_up(cl, LANE)
    ncp = _round_up(nc, LANE)

    s_scale = p['stem_gamma'] / jnp.sqrt(p['stem_var'] + BN_EPS)
    s_shift = p['stem_beta'] - p['stem_mean'] * s_scale
    h_scale = p['head_gamma'] / jnp.sqrt(p['head_var'] + BN_EPS)
    h_shift = p['head_beta'] - p['head_mean'] * h_scale

    stem_w = _pad2(p['stem_w'] * s_scale[None, :], kp, c0p).astype(jnp.bfloat16)
    stem_b = _pad2(s_shift[None, :], 1, c0p).astype(jnp.float32)
    head_w = _pad2(p['head_w'] * h_scale[None, :], c0p, clp).astype(jnp.bfloat16)
    head_b = _pad2(h_shift[None, :], 1, clp).astype(jnp.float32)
    cls_w = _pad2(p['cls_w'], clp, ncp).astype(jnp.float32)
    cls_b = _pad2(p['cls_b'][None, :], 1, ncp).astype(jnp.float32)

    return dict(stem_w=stem_w, stem_b=stem_b, head_w=head_w, head_b=head_b,
                cls_w=cls_w, cls_b=cls_b, stem_stride=p['stem_stride'],
                dims=(kp, c0p, clp, ncp, nc))


def network_forward(x_nchw, prep):
    x = jnp.transpose(x_nchw, (0, 2, 3, 1)).astype(jnp.float32)   # NCHW -> NHWC
    n = x.shape[0]
    kp, c0p, clp, ncp, nc = prep['dims']

    # ---- stem im2col (wrapper side), fed in bf16 ----
    patches, hout, wout = im2col(x, 3, 3, prep['stem_stride'], 1)
    m = patches.shape[0]
    hw = hout * wout

    # row-tile size: single full tile when small, 512-row tiles when large
    if m > TM_MAX:
        tm = TM_MAX
        m_pad = _round_up(m, tm)
    else:
        m_pad = _round_up(m, SUB)
        tm = m_pad
    n_pad = _round_up(n, SUB)

    patches_p = _pad2(patches, m_pad, kp).astype(jnp.bfloat16)

    grid = (m_pad // tm,)

    flops = (2 * m_pad * kp * c0p + 2 * m_pad * c0p * clp
             + 2 * n_pad * m_pad * clp + 2 * n_pad * clp * ncp)
    transcendentals = m_pad * (c0p + clp)
    bytes_accessed = (m_pad * kp * 2 + kp * c0p * 2 + c0p * clp * 2
                      + c0p * 4 + clp * 4
                      + clp * ncp * 4 + ncp * 4 + n_pad * ncp * 4)

    kernel = functools.partial(_fused_net_kernel,
                               m_rows=m, hw=hw, tm=tm, n_pad=n_pad)

    out = pl.pallas_call(
        kernel,
        out_shape=jax.ShapeDtypeStruct((n_pad, ncp), jnp.float32),
        grid_spec=pltpu.PrefetchScalarGridSpec(
            num_scalar_prefetch=0,
            grid=grid,
            in_specs=[
                pl.BlockSpec((tm, kp), lambda i: (i, 0)),       # patches
                pl.BlockSpec((kp, c0p), lambda i: (0, 0)),      # stem_w
                pl.BlockSpec((1, c0p), lambda i: (0, 0)),       # stem_b
                pl.BlockSpec((c0p, clp), lambda i: (0, 0)),     # head_w
                pl.BlockSpec((1, clp), lambda i: (0, 0)),       # head_b
                pl.BlockSpec((clp, ncp), lambda i: (0, 0)),     # cls_w
                pl.BlockSpec((1, ncp), lambda i: (0, 0)),       # cls_b
            ],
            out_specs=pl.BlockSpec((n_pad, ncp), lambda i: (0, 0)),
            scratch_shapes=[pltpu.VMEM((n_pad, clp), jnp.float32)],
        ),
        compiler_params=pltpu.CompilerParams(
            dimension_semantics=("arbitrary",),     # reduction axis (pooling)
            vmem_limit_bytes=32 * 1024 * 1024,      # safe on v5e/v6e/v7x
        ),
        cost_estimate=pl.CostEstimate(
            flops=flops, transcendentals=transcendentals,
            bytes_accessed=bytes_accessed),
    )(patches_p, prep['stem_w'], prep['stem_b'],
      prep['head_w'], prep['head_b'],
      prep['cls_w'], prep['cls_b'])

    return out[:n, :nc]


if __name__ == "__main__":
    key = jax.random.PRNGKey(0)
    k_param, k_in = jax.random.split(key)

    params = init_params(k_param,
                         network_channels=(16, 16),
                         strides=(2, 1),
                         last_channels=32,
                         num_classes=10)
    prep = prepare_params(params)

    x = jax.random.normal(k_in, (2, 3, 16, 16), jnp.float32)   # NCHW, like PyTorch

    out = network_forward(x, prep)
    jax.block_until_ready(out)
    assert out.shape == (2, 10), out.shape
    assert bool(jnp.isfinite(out).all())
    print("KERNEL_OK")
</pallas_src>

<mosaic_0001>
module attributes {stable_mosaic.version = 11 : i64} {
  func.func @_fused_net_kernel(%arg0: i32, %arg1: memref<128x128xbf16, #tpu.memory_space<vmem>>, %arg2: memref<128x128xbf16, #tpu.memory_space<vmem>>, %arg3: memref<1x128xf32, #tpu.memory_space<vmem>>, %arg4: memref<128x128xbf16, #tpu.memory_space<vmem>>, %arg5: memref<1x128xf32, #tpu.memory_space<vmem>>, %arg6: memref<128x128xf32, #tpu.memory_space<vmem>>, %arg7: memref<1x128xf32, #tpu.memory_space<vmem>>, %arg8: memref<8x128xf32, #tpu.memory_space<vmem>>, %arg9: memref<8x128xf32, #tpu.memory_space<vmem>>) attributes {dimension_semantics = [#tpu.dimension_semantics<arbitrary>], iteration_bounds = array<i64: 1>, scalar_prefetch = 0 : i64, scratch_operands = 1 : i64, tpu.core_type = #tpu.core_type<tc>, window_params = [{transform_indices = @transform_0, window_bounds = array<i64: 128, 128>}, {pipeline_mode = #tpu.pipeline_mode<synchronous>, transform_indices = @transform_1, window_bounds = array<i64: 128, 128>}, {pipeline_mode = #tpu.pipeline_mode<synchronous>, transform_indices = @transform_2, window_bounds = array<i64: 1, 128>}, {pipeline_mode = #tpu.pipeline_mode<synchronous>, transform_indices = @transform_3, window_bounds = array<i64: 128, 128>}, {pipeline_mode = #tpu.pipeline_mode<synchronous>, transform_indices = @transform_4, window_bounds = array<i64: 1, 128>}, {pipeline_mode = #tpu.pipeline_mode<synchronous>, transform_indices = @transform_5, window_bounds = array<i64: 128, 128>}, {pipeline_mode = #tpu.pipeline_mode<synchronous>, transform_indices = @transform_6, window_bounds = array<i64: 1, 128>}, {pipeline_mode = #tpu.pipeline_mode<synchronous>, transform_indices = @transform_7, window_bounds = array<i64: 8, 128>}]} {
    %c0_i32 = arith.constant 0 : i32
    %0 = arith.cmpi eq, %arg0, %c0_i32 : i32
    %1 = arith.extui %0 : i1 to i32
    %c0_i32_0 = arith.constant 0 : i32
    %2 = arith.cmpi ne, %1, %c0_i32_0 : i32
    scf.if %2 {
      %cst_24 = arith.constant 0.000000e+00 : f32
      %52 = vector.broadcast %cst_24 : f32 to vector<8x128xf32>
      %c0_25 = arith.constant 0 : index
      %c0_26 = arith.constant 0 : index
      %53 = vector.load %arg9[%c0_25, %c0_26] : memref<8x128xf32, #tpu.memory_space<vmem>>, vector<8x128xf32>
      tpu.vector_store %arg9[%c0_25, %c0_26], %52 {strides = array<i32>} : memref<8x128xf32, #tpu.memory_space<vmem>>, vector<8x128xf32>,
    } else {
    }
    %c0 = arith.constant 0 : index
    %c0_1 = arith.constant 0 : index
    %3 = vector.load %arg1[%c0, %c0_1] : memref<128x128xbf16, #tpu.memory_space<vmem>>, vector<128x128xbf16>
    %c0_2 = arith.constant 0 : index
    %c0_3 = arith.constant 0 : index
    %4 = vector.load %arg2[%c0_2, %c0_3] : memref<128x128xbf16, #tpu.memory_space<vmem>>, vector<128x128xbf16>
    %cst = arith.constant dense<0.000000e+00> : vector<128x128xf32>
    %5 = tpu.matmul %3, %4, %cst {dimension_numbers = #tpu.dot_dimension_numbers<[1], [0], [0], [1], [0, 0, 1, 1], [], []>} : vector<128x128xbf16>, vector<128x128xbf16>, vector<128x128xf32> -> vector<128x128xf32>
    %c0_4 = arith.constant 0 : index
    %c0_5 = arith.constant 0 : index
    %6 = vector.load %arg3[%c0_4, %c0_5] : memref<1x128xf32, #tpu.memory_space<vmem>>, vector<1x128xf32>
    %7 = vector.broadcast %6 : vector<1x128xf32> to vector<128x128xf32>
    %8 = arith.addf %5, %7 : vector<128x128xf32>
    %9 = arith.negf %8 : vector<128x128xf32>
    %10 = math.exp %9 : vector<128x128xf32>
    %cst_6 = arith.constant 1.000000e+00 : f32
    %11 = vector.broadcast %cst_6 : f32 to vector<128x128xf32>
    %12 = arith.addf %11, %10 : vector<128x128xf32>
    %13 = arith.divf %11, %12 : vector<128x128xf32>
    %14 = arith.mulf %8, %13 : vector<128x128xf32>
    %15 = arith.truncf %14 : vector<128x128xf32> to vector<128x128xbf16>
    %c0_7 = arith.constant 0 : index
    %c0_8 = arith.constant 0 : index
    %16 = vector.load %arg4[%c0_7, %c0_8] : memref<128x128xbf16, #tpu.memory_space<vmem>>, vector<128x128xbf16>
    %cst_9 = arith.constant dense<0.000000e+00> : vector<128x128xf32>
    %17 = tpu.matmul %15, %16, %cst_9 {dimension_numbers = #tpu.dot_dimension_numbers<[1], [0], [0], [1], [0, 0, 1, 1], [], []>} : vector<128x128xbf16>, vector<128x128xbf16>, vector<128x128xf32> -> vector<128x128xf32>
    %c0_10 = arith.constant 0 : index
    %c0_11 = arith.constant 0 : index
    %18 = vector.load %arg5[%c0_10, %c0_11] : memref<1x128xf32, #tpu.memory_space<vmem>>, vector<1x128xf32>
    %19 = vector.broadcast %18 : vector<1x128xf32> to vector<128x128xf32>
    %20 = arith.addf %17, %19 : vector<128x128xf32>
    %21 = arith.negf %20 : vector<128x128xf32>
    %22 = math.exp %21 : vector<128x128xf32>
    %cst_12 = arith.constant 1.000000e+00 : f32
    %23 = vector.broadcast %cst_12 : f32 to vector<128x128xf32>
    %24 = arith.addf %23, %22 : vector<128x128xf32>
    %25 = arith.divf %23, %24 : vector<128x128xf32>
    %26 = arith.mulf %20, %25 : vector<128x128xf32>
    %c128_i32 = arith.constant 128 : i32
    %27 = arith.muli %arg0, %c128_i32 : i32
    %28 = tpu.iota {dimensions = array<i32: 1>} : vector<8x128xi32>
    %29 = vector.broadcast %27 : i32 to vector<8x128xi32>
    %30 = arith.addi %28, %29 : vector<8x128xi32>
    %31 = tpu.iota {dimensions = array<i32: 0>} : vector<8x128xi32>
    %c64_i32 = arith.constant 64 : i32
    %32 = vector.broadcast %c64_i32 : i32 to vector<8x128xi32>
    %33 = arith.muli %31, %32 : vector<8x128xi32>
    %34 = arith.cmpi sge, %30, %33 : vector<8x128xi32>
    %c64_i32_13 = arith.constant 64 : i32
    %35 = vector.broadcast %c64_i32_13 : i32 to vector<8x128xi32>
    %36 = arith.addi %33, %35 : vector<8x128xi32>
    %37 = arith.cmpi slt, %30, %36 : vector<8x128xi32>
    %38 = arith.andi %34, %37 : vector<8x128xi1>
    %c128_i32_14 = arith.constant 128 : i32
    %39 = vector.broadcast %c128_i32_14 : i32 to vector<8x128xi32>
    %40 = arith.cmpi slt, %30, %39 : vector<8x128xi32>
    %41 = arith.andi %38, %40 : vector<8x128xi1>
    %cst_15 = arith.constant 1.562500e-02 : f32
    %cst_16 = arith.constant 0.000000e+00 : f32
    %42 = vector.broadcast %cst_15 : f32 to vector<8x128xf32>
    %43 = vector.broadcast %cst_16 : f32 to vector<8x128xf32>
    %44 = arith.select %41, %42, %43 : vector<8x128xi1>, vector<8x128xf32>
    %c0_17 = arith.constant 0 : index
    %c0_18 = arith.constant 0 : index
    %45 = vector.load %arg9[%c0_17, %c0_18] : memref<8x128xf32, #tpu.memory_space<vmem>>, vector<8x128xf32>
    %cst_19 = arith.constant dense<0.000000e+00> : vector<8x128xf32>
    %46 = tpu.matmul %44, %26, %cst_19 {dimension_numbers = #tpu.dot_dimension_numbers<[1], [0], [0], [1], [0, 0, 1, 1], [], []>} : vector<8x128xf32>, vector<128x128xf32>, vector<8x128xf32> -> vector<8x128xf32>
    %47 = arith.addf %45, %46 : vector<8x128xf32>
    %c0_20 = arith.constant 0 : index
    %c0_21 = arith.constant 0 : index
    %48 = vector.load %arg9[%c0_20, %c0_21] : memref<8x128xf32, #tpu.memory_space<vmem>>, vector<8x128xf32>
    tpu.vector_store %arg9[%c0_20, %c0_21], %47 {strides = array<i32>} : memref<8x128xf32, #tpu.memory_space<vmem>>, vector<8x128xf32>,
    %c0_i32_22 = arith.constant 0 : i32
    %49 = arith.cmpi eq, %arg0, %c0_i32_22 : i32
    %50 = arith.extui %49 : i1 to i32
    %c0_i32_23 = arith.constant 0 : i32
    %51 = arith.cmpi ne, %50, %c0_i32_23 : i32
    scf.if %51 {
      %c0_24 = arith.constant 0 : index
      %c0_25 = arith.constant 0 : index
      %52 = vector.load %arg9[%c0_24, %c0_25] : memref<8x128xf32, #tpu.memory_space<vmem>>, vector<8x128xf32>
      %c0_26 = arith.constant 0 : index
      %c0_27 = arith.constant 0 : index
      %53 = vector.load %arg6[%c0_26, %c0_27] : memref<128x128xf32, #tpu.memory_space<vmem>>, vector<128x128xf32>
      %cst_28 = arith.constant dense<0.000000e+00> : vector<8x128xf32>
      %54 = tpu.matmul %52, %53, %cst_28 {dimension_numbers = #tpu.dot_dimension_numbers<[1], [0], [0], [1], [0, 0, 1, 1], [], []>} : vector<8x128xf32>, vector<128x128xf32>, vector<8x128xf32> -> vector<8x128xf32>
      %c0_29 = arith.constant 0 : index
      %c0_30 = arith.constant 0 : index
      %55 = vector.load %arg7[%c0_29, %c0_30] : memref<1x128xf32, #tpu.memory_space<vmem>>, vector<1x128xf32>
      %56 = vector.broadcast %55 : vector<1x128xf32> to vector<8x128xf32>
      %57 = arith.addf %54, %56 : vector<8x128xf32>
      %c0_31 = arith.constant 0 : index
      %c0_32 = arith.constant 0 : index
      %58 = vector.load %arg8[%c0_31, %c0_32] : memref<8x128xf32, #tpu.memory_space<vmem>>, vector<8x128xf32>
      tpu.vector_store %arg8[%c0_31, %c0_32], %57 {strides = array<i32>} : memref<8x128xf32, #tpu.memory_space<vmem>>, vector<8x128xf32>,
    } else {
    }
    return
  }
  func.func @transform_0(%arg0: i32) -> (i32, i32) {
    %c0_i32 = arith.constant 0 : i32
    %c0_i32_0 = arith.constant 0 : i32
    return %arg0, %c0_i32 : i32, i32
  }
  func.func @transform_1(%arg0: i32) -> (i32, i32) {
    %c0_i32 = arith.constant 0 : i32
    %c0_i32_0 = arith.constant 0 : i32
    %c0_i32_1 = arith.constant 0 : i32
    return %c0_i32, %c0_i32_0 : i32, i32
  }
  func.func @transform_2(%arg0: i32) -> (i32, i32) {
    %c0_i32 = arith.constant 0 : i32
    %c0_i32_0 = arith.constant 0 : i32
    %c0_i32_1 = arith.constant 0 : i32
    return %c0_i32, %c0_i32_0 : i32, i32
  }
  func.func @transform_3(%arg0: i32) -> (i32, i32) {
    %c0_i32 = arith.constant 0 : i32
    %c0_i32_0 = arith.constant 0 : i32
    %c0_i32_1 = arith.constant 0 : i32
    return %c0_i32, %c0_i32_0 : i32, i32
  }
  func.func @transform_4(%arg0: i32) -> (i32, i32) {
    %c0_i32 = arith.constant 0 : i32
    %c0_i32_0 = arith.constant 0 : i32
    %c0_i32_1 = arith.constant 0 : i32
    return %c0_i32, %c0_i32_0 : i32, i32
  }
  func.func @transform_5(%arg0: i32) -> (i32, i32) {
    %c0_i32 = arith.constant 0 : i32
    %c0_i32_0 = arith.constant 0 : i32
    %c0_i32_1 = arith.constant 0 : i32
    return %c0_i32, %c0_i32_0 : i32, i32
  }
  func.func @transform_6(%arg0: i32) -> (i32, i32) {
    %c0_i32 = arith.constant 0 : i32
    %c0_i32_0 = arith.constant 0 : i32
    %c0_i32_1 = arith.constant 0 : i32
    return %c0_i32, %c0_i32_0 : i32, i32
  }
  func.func @transform_7(%arg0: i32) -> (i32, i32) {
    %c0_i32 = arith.constant 0 : i32
    %c0_i32_0 = arith.constant 0 : i32
    %c0_i32_1 = arith.constant 0 : i32
    return %c0_i32, %c0_i32_0 : i32, i32
  }
}

</mosaic_0001>

<bundles_post_ra>
// kernel: tpu_custom_call.1
= control target key start
LH: loop header
LB: loop body
LE: loop exit
PB: predicated region body
PF: predicated region fallthrough
CT: control target
= control target key end

     0   :  { %12 = vsyncpa [#allocation4], 0  ;;  %s1839_s0 = inlined_call_operand.hbm [shape: bf16[128,128], index: 0, kind: input, shape index: {}]   ;;  %s1840_s1 = inlined_call_operand.hbm [shape: bf16[128,128], index: 1, kind: input, shape index: {}]   ;;  %s1841_s2 = inlined_call_operand.vmem [shape: f32[1,128], index: 2, kind: input, shape index: {}]   ;;  %s1842_s3 = inlined_call_operand.hbm [shape: bf16[128,128], index: 3, kind: input, shape index: {}]   ;;  %s1843_s4 = inlined_call_operand.vmem [shape: f32[1,128], index: 4, kind: input, shape index: {}]   ;;  %s1844_s5 = inlined_call_operand.hbm [shape: f32[128,128], index: 5, kind: input, shape index: {}]   ;;  %s1845_s6 = inlined_call_operand.vmem [shape: f32[1,128], index: 6, kind: input, shape index: {}]   ;;  %s1846_s7 = inlined_call_operand.hbm [shape: f32[8,128], index: 7, kind: output, shape index: {}]  }
   0x1   :  { %13 = vsyncpa [#allocation7], 0 }
   0x2   :  { %14 = vsyncpa [#allocation10], 0 }
   0x3   :  { %15 = vsyncpa [#allocation5], 0  ;;  %s1514_s24 = smov [#allocation6]   ;;  %s1515_s26 = smov [#allocation3]  }
   0x4   :  { %s33_s25 = sshll.u32 %s1514_s24, 4  ;;  %s21_s27 = sshll.u32 %s1515_s26, 4  ;;  %s34_s25 = int_to_ptr.vmem [resolvable:$true] %s33_s25  ;;  %s1567_s27 = int_to_ptr.vmem [resolvable:$true] %s21_s27 }
   0x5   :  { %s1396_s30 = scalar_lea.hbm %s1840_s1, 1024 }
   0x6   :  { %p1397_p0 = scmp.ne.s32.totalorder %s1840_s1, %s1396_s30  ;;  %p1400_p1 = scmp.lt.u32.totalorder %s1396_s30, %s1840_s1 }
   0x8   :  { %p1402_p2 = pnand %p1400_p1, %p1397_p0 }
   0xa   :  { %1405 = shalt.err (!%p1402_p2)
}
   0xb   :  { %s1406_s12 = scalar_lea.vmem %s34_s25, 1024  ;;  %p1411_p4 = scmp.lt.s32.totalorder %s34_s25, %s34_s25 }
   0xc   :  { %p1407_p3 = scmp.ne.s32.totalorder %s34_s25, %s1406_s12  ;;  %p1412_p5 = scmp.lt.s32.totalorder %s1406_s12, %s1406_s12 }
   0xe   :  { %p1413_p6 = por %p1412_p5, %p1411_p4 }
  0x10   :  { %p1414_p7 = pnand %p1413_p6, %p1407_p3 }
  0x12   :  { %1417 = shalt.err (!%p1414_p7)
}
  0x13   :  { %s1516_s13 = smov 64   ;;  %s1517_s14 = smov 4  }
  0x14   :  { %39 = dma.hbm_to_vmem [thread:$0]  %s1840_s1, 1024, %s34_s25, [#allocation7], %s1516_s13, %s1516_s13, %s1517_s14  }
  0x15   :  { %s1418_s19 = scalar_lea.hbm %s1839_s0, 1024 }
  0x16   :  { %p1419_p8 = scmp.ne.s32.totalorder %s1839_s0, %s1418_s19  ;;  %p1422_p9 = scmp.lt.u32.totalorder %s1418_s19, %s1839_s0 }
  0x18   :  { %p1424_p10 = pnand %p1422_p9, %p1419_p8 }
  0x1a   :  { %1427 = shalt.err (!%p1424_p10)
}
  0x1b   :  { %s1428_s24 = scalar_lea.vmem %s1567_s27, 1024  ;;  %p1433_p12 = scmp.lt.s32.totalorder %s1567_s27, %s1567_s27 }
  0x1c   :  { %p1429_p11 = scmp.ne.s32.totalorder %s1567_s27, %s1428_s24  ;;  %p1434_p13 = scmp.lt.s32.totalorder %s1428_s24, %s1428_s24 }
  0x1e   :  { %p1435_p0 = por %p1434_p13, %p1433_p12 }
  0x20   :  { %p1436_p1 = pnand %p1435_p0, %p1429_p11 }
  0x22   :  { %1439 = shalt.err (!%p1436_p1)
}
  0x23   :  { %27 = dma.hbm_to_vmem [thread:$0]  %s1839_s0, 1024, %s1567_s27, [#allocation4], %s1516_s13, %s1516_s13, %s1517_s14  }
  0x24   :  { %s1518_s26 = smov [#allocation8]   ;;  %s1519_s29 = smov [#allocation9]  }
  0x25   :  { %s47_s28 = sshll.u32 %s1518_s26, 4  ;;  %s61_s30 = sshll.u32 %s1519_s29, 4  ;;  %s48_s28 = int_to_ptr.vmem [resolvable:$true] %s47_s28  ;;  %s1604_s30 = int_to_ptr.vmem [resolvable:$true] %s61_s30 }
  0x26   :  { %s1440_s10 = scalar_lea.hbm %s1842_s3, 1024 }
  0x27   :  { %p1441_p2 = scmp.ne.s32.totalorder %s1842_s3, %s1440_s10  ;;  %p1444_p3 = scmp.lt.u32.totalorder %s1440_s10, %s1842_s3 }
  0x29   :  { %p1446_p4 = pnand %p1444_p3, %p1441_p2 }
  0x2b   :  { %1449 = shalt.err (!%p1446_p4)
}
  0x2c   :  { %s1450_s0 = scalar_lea.vmem %s48_s28, 1024  ;;  %p1455_p6 = scmp.lt.s32.totalorder %s48_s28, %s48_s28 }
  0x2d   :  { %p1451_p5 = scmp.ne.s32.totalorder %s48_s28, %s1450_s0  ;;  %p1456_p7 = scmp.lt.s32.totalorder %s1450_s0, %s1450_s0 }
  0x2f   :  { %p1457_p8 = por %p1456_p7, %p1455_p6 }
  0x31   :  { %p1458_p9 = pnand %p1457_p8, %p1451_p5 }
  0x33   :  { %1461 = shalt.err (!%p1458_p9)
}
  0x34   :  { %53 = dma.hbm_to_vmem [thread:$0]  %s1842_s3, 1024, %s48_s28, [#allocation7], %s1516_s13, %s1516_s13, %s1517_s14  }
  0x35   :  { %s1462_s20 = scalar_lea.hbm %s1844_s5, 2048 }
  0x36   :  { %p1463_p10 = scmp.ne.s32.totalorder %s1844_s5, %s1462_s20  ;;  %p1466_p11 = scmp.lt.u32.totalorder %s1462_s20, %s1844_s5 }
  0x38   :  { %p1468_p12 = pnand %p1466_p11, %p1463_p10 }
  0x3a   :  { %1471 = shalt.err (!%p1468_p12)
}
  0x3b   :  { %s1472_s1 = scalar_lea.vmem %s1604_s30, 2048  ;;  %p1477_p0 = scmp.lt.s32.totalorder %s1604_s30, %s1604_s30 }
  0x3c   :  { %p1473_p13 = scmp.ne.s32.totalorder %s1604_s30, %s1472_s1  ;;  %p1478_p1 = scmp.lt.s32.totalorder %s1472_s1, %s1472_s1 }
  0x3e   :  { %p1479_p2 = por %p1478_p1, %p1477_p0 }
  0x40   :  { %p1480_p3 = pnand %p1479_p2, %p1473_p13 }
  0x42   :  { %1483 = shalt.err (!%p1480_p3)
}
  0x43   :  { %s1520_s3 = smov 128   ;;  %s1521_s13 = smov 8  }
  0x44   :  { %67 = dma.hbm_to_vmem [thread:$0]  %s1844_s5, 2048, %s1604_s30, [#allocation10], %s1520_s3, %s1520_s3, %s1521_s13  }
  0x45   :  { %1506 = dma.done.wait [#allocation4], 1024  }
  0x46   :  { %1507 = vsyncadd [#allocation4], 4294966272 }
  0x47   :  { %1508 = dma.done.wait [#allocation7], 2048  }
  0x48   :  { %1509 = vsyncadd [#allocation7], 4294965248 }
  0x49   :  { %1510 = dma.done.wait [#allocation10], 2048  }
  0x4a   :  { %1511 = vsyncadd [#allocation10], 4294965248  ;;  %v1244_v0 = vld [vmem:[#allocation6] sm:$0xff]   ;;  %v1245_v1 = vld [vmem:[#allocation6 + $0x8] sm:$0xff]   ;;  %vm1523_vm0 = vmmov 0   ;;  %s1526_s30 = smov [#allocation11]  }
  0x4b   :  { %1049 = vmatprep.subr.bf16.mxu0 %v1244_v0  ;;  %v1246_v2 = vld [vmem:[#allocation6 + $0x10] sm:$0xff]   ;;  %v1247_v3 = vld [vmem:[#allocation6 + $0x18] sm:$0xff]   ;;  %v1252_v4 = vld [vmem:[#allocation3] sm:$0xff]   ;;  %s912_s8 = sshll.u32 %s1526_s30, 4  ;;  %s913_s8 = int_to_ptr.vmem [resolvable:$true] %s912_s8 }
  0x4c   :  { %1050 = vmatpush3.bf16.msra.mxu0 %v1244_v0  ;;  %1065 = vmatprep.mubr.bf16.mxu0 %v1252_v4  ;;  %v1248_v5 = vld [vmem:[#allocation6 + $0x20] sm:$0xff]   ;;  %v1249_v6 = vld [vmem:[#allocation6 + $0x28] sm:$0xff]   ;;  %v1250_v7 = vld [vmem:[#allocation6 + $0x30] sm:$0xff]   ;;  %s1484_s9 = scalar_lea.vmem %s913_s8, 128  ;;  %p1489_p5 = scmp.lt.s32.totalorder %s913_s8, %s913_s8 }
  0x4d   :  { %1051 = vmatprep.subr.bf16.mxu0 %v1245_v1  ;;  %v1251_v8 = vld [vmem:[#allocation6 + $0x38] sm:$0xff]   ;;  %v1253_v9 = vld [vmem:[#allocation3 + $0x8] sm:$0xff]   ;;  %v1254_v10 = vld [vmem:[#allocation3 + $0x10] sm:$0xff]   ;;  %p1485_p4 = scmp.ne.s32.totalorder %s913_s8, %s1484_s9  ;;  %p1490_p6 = scmp.lt.s32.totalorder %s1484_s9, %s1484_s9 }
  0x4e   :  { %v1255_v11 = vld [vmem:[#allocation3 + $0x18] sm:$0xff]   ;;  %v1256_v12 = vld [vmem:[#allocation3 + $0x20] sm:$0xff]   ;;  %v1257_v13 = vld [vmem:[#allocation3 + $0x28] sm:$0xff]  }
  0x4f   :  { %v1258_v14 = vld [vmem:[#allocation3 + $0x30] sm:$0xff]   ;;  %v1259_v15 = vld [vmem:[#allocation3 + $0x38] sm:$0xff]   ;;  %v1260_v16 = vld [vmem:[#allocation8] sm:$0xff]   ;;  %p1491_p7 = por %p1490_p6, %p1489_p5 }
  0x50   :  { %1052 = vmatpush3.bf16.msra.mxu0 %v1245_v1  ;;  %1081 = vmatprep.subr.bf16.mxu1 %v1260_v16  ;;  %v1261_v17 = vld [vmem:[#allocation8 + $0x8] sm:$0xff]   ;;  %v1262_v18 = vld [vmem:[#allocation8 + $0x10] sm:$0xff]   ;;  %v1263_v19 = vld [vmem:[#allocation8 + $0x18] sm:$0xff]  }
  0x51   :  { %1053 = vmatprep.subr.bf16.mxu0 %v1246_v2  ;;  %1082 = vmatpush3.bf16.msra.mxu1 %v1260_v16  ;;  %v1264_v20 = vld [vmem:[#allocation8 + $0x20] sm:$0xff]   ;;  %v1265_v21 = vld [vmem:[#allocation8 + $0x28] sm:$0xff]   ;;  %v1266_v22 = vld [vmem:[#allocation8 + $0x30] sm:$0xff]   ;;  %p1492_p8 = pnand %p1491_p7, %p1485_p4 }
  0x52   :  { %1083 = vmatprep.subr.bf16.mxu1 %v1261_v17  ;;  %v1267_v23 = vld [vmem:[#allocation8 + $0x38] sm:$0xff]   ;;  %v1641_v24 = vld [vmem:[%s1841_s2] ss:$0 sm:$0xff] }
  0x54   :  { %1054 = vmatpush3.bf16.msra.mxu0 %v1246_v2 }
  0x55   :  { %1055 = vmatprep.subr.bf16.mxu0 %v1247_v3  ;;  %1084 = vmatpush3.bf16.msra.mxu1 %v1261_v17 }
  0x56   :  { %1085 = vmatprep.subr.bf16.mxu1 %v1262_v18 }
  0x58   :  { %1056 = vmatpush3.bf16.msra.mxu0 %v1247_v3 }
  0x59   :  { %1057 = vmatprep.subr.bf16.mxu0 %v1248_v5  ;;  %1086 = vmatpush3.bf16.msra.mxu1 %v1262_v18 }
  0x5a   :  { %1087 = vmatprep.subr.bf16.mxu1 %v1263_v19 }
  0x5c   :  { %1058 = vmatpush3.bf16.msra.mxu0 %v1248_v5 }
  0x5d   :  { %1059 = vmatprep.subr.bf16.mxu0 %v1249_v6  ;;  %1088 = vmatpush3.bf16.msra.mxu1 %v1263_v19 }
  0x5e   :  { %1089 = vmatprep.subr.bf16.mxu1 %v1264_v20 }
  0x60   :  { %1060 = vmatpush3.bf16.msra.mxu0 %v1249_v6 }
  0x61   :  { %1061 = vmatprep.subr.bf16.mxu0 %v1250_v7  ;;  %1090 = vmatpush3.bf16.msra.mxu1 %v1264_v20 }
  0x62   :  { %1091 = vmatprep.subr.bf16.mxu1 %v1265_v21 }
  0x64   :  { %1062 = vmatpush3.bf16.msra.mxu0 %v1250_v7 }
  0x65   :  { %1063 = vmatprep.subr.bf16.mxu0 %v1251_v8  ;;  %1092 = vmatpush3.bf16.msra.mxu1 %v1265_v21 }
  0x66   :  { %1093 = vmatprep.subr.bf16.mxu1 %v1266_v22 }
  0x68   :  { %1064 = vmatpush3.bf16.msra.mxu0 %v1251_v8 }
  0x69   :  { %1094 = vmatpush3.bf16.msra.mxu1 %v1266_v22 }
  0x6a   :  { %1095 = vmatprep.subr.bf16.mxu1 %v1267_v23 }
  0x6b   :  { %1066 = vmatmul.mubr.bf16.vlgmr.msra.gmra.mrb[0].mxu0 %v1253_v9 }
  0x6c   :  { %1069 = vmatprep.mubr.bf16.mxu0 %v1254_v10 }
  0x6d   :  { %1096 = vmatpush3.bf16.msra.mxu1 %v1267_v23 }
  0x73   :  { %1070 = vmatmul.mubr.bf16.gmra.mrb[4].mxu0 %v1255_v11 }
  0x74   :  { %1073 = vmatprep.mubr.bf16.mxu0 %v1256_v12 }
  0x7b   :  { %1074 = vmatmul.mubr.bf16.gmra.mrb[8].mxu0 %v1257_v13 }
  0x7c   :  { %1077 = vmatprep.mubr.bf16.mxu0 %v1258_v14 }
  0x83   :  { %1078 = vmatmul.mubr.bf16.gmra.mrb[12].mxu0 %v1259_v15 }
 0x13e   :  { %v1067_v25 = vpop.f32.mrb[0].mxu0 }
 0x13f   :  { %v1644_v26 = vadd.f32 %v1067_v25, %v1641_v24  ;;  %v257_v27 = vpop.f32.mrb[1].mxu0 }
 0x140   :  { %v1647_v28 = vadd.f32 %v1641_v24, %v257_v27  ;;  %v1068_v29 = vpop.f32.mrb[2].mxu0 }
 0x141   :  { %v942_v30 = vmul.f32 -1.442695, %v1644_v26  ;;  %v1651_v31 = vadd.f32 %v1068_v29, %v1641_v24  ;;  %v260_v32 = vpop.f32.mrb[3].mxu0 }
 0x142   :  { %v940_v33 = vmul.f32 -1.442695, %v1647_v28  ;;  %v1655_v34 = vadd.f32 %v1641_v24, %v260_v32 }
 0x143   :  { %1268 = vpow2.f32 %v942_v30  ;;  %v943_v35 = vmul.f32 -1.442695, %v1651_v31 }
 0x144   :  { %1270 = vpow2.f32 %v940_v33  ;;  %v941_v36 = vmul.f32 -1.442695, %v1655_v34 }
 0x145   :  { %1272 = vpow2.f32 %v943_v35 }
 0x146   :  { %1274 = vpow2.f32 %v941_v36  ;;  %v1071_v37 = vpop.f32.mrb[4].mxu0 }
 0x147   :  { %v1660_v38 = vadd.f32 %v1071_v37, %v1641_v24  ;;  %v273_v39 = vpop.f32.mrb[5].mxu0 }
 0x148   :  { %v1663_v40 = vadd.f32 %v1641_v24, %v273_v39  ;;  %v1072_v41 = vpop.f32.mrb[6].mxu0 }
 0x149   :  { %v946_v42 = vmul.f32 -1.442695, %v1660_v38  ;;  %v1667_v43 = vadd.f32 %v1072_v41, %v1641_v24  ;;  %v276_v44 = vpop.f32.mrb[7].mxu0 }
 0x14a   :  { %v944_v45 = vmul.f32 -1.442695, %v1663_v40  ;;  %v1671_v46 = vadd.f32 %v1641_v24, %v276_v44 }
 0x14b   :  { %1276 = vpow2.f32 %v946_v42  ;;  %v947_v47 = vmul.f32 -1.442695, %v1667_v43 }
 0x14c   :  { %1278 = vpow2.f32 %v944_v45  ;;  %v945_v48 = vmul.f32 -1.442695, %v1671_v46 }
 0x14d   :  { %v1269_v49 = vpop.eup %1268  ;;  %1280 = vpow2.f32 %v947_v47 }
 0x14e   :  { %v1271_v50 = vpop.eup %1270  ;;  %v370_v51 = vadd.f32 1.0, %v1269_v49  ;;  %1282 = vpow2.f32 %v945_v48  ;;  %v1075_v52 = vpop.f32.mrb[8].mxu0 }
 0x14f   :  { %v1273_v53 = vpop.eup %1272  ;;  %v368_v54 = vadd.f32 1.0, %v1271_v50  ;;  %v1676_v55 = vadd.f32 %v1075_v52, %v1641_v24  ;;  %v289_v56 = vpop.f32.mrb[9].mxu0 }
 0x150   :  { %v1275_v57 = vpop.eup %1274  ;;  %1284 = vrcp.f32 %v370_v51  ;;  %v371_v58 = vadd.f32 1.0, %v1273_v53  ;;  %v1679_v59 = vadd.f32 %v1641_v24, %v289_v56  ;;  %v1076_v60 = vpop.f32.mrb[10].mxu0 }
 0x151   :  { %1286 = vrcp.f32 %v368_v54  ;;  %v369_v61 = vadd.f32 1.0, %v1275_v57  ;;  %v950_v62 = vmul.f32 -1.442695, %v1676_v55  ;;  %v1683_v63 = vadd.f32 %v1076_v60, %v1641_v24  ;;  %v292_v0 = vpop.f32.mrb[11].mxu0 }
 0x152   :  { %1288 = vrcp.f32 %v371_v58  ;;  %v948_v1 = vmul.f32 -1.442695, %v1679_v59  ;;  %v1687_v2 = vadd.f32 %v1641_v24, %v292_v0 }
 0x153   :  { %1290 = vrcp.f32 %v369_v61  ;;  %v951_v3 = vmul.f32 -1.442695, %v1683_v63 }
 0x154   :  { %1292 = vpow2.f32 %v950_v62  ;;  %v949_v4 = vmul.f32 -1.442695, %v1687_v2 }
 0x155   :  { %v1277_v5 = vpop.eup %1276  ;;  %1294 = vpow2.f32 %v948_v1 }
 0x156   :  { %v1279_v6 = vpop.eup %1278  ;;  %v374_v7 = vadd.f32 1.0, %v1277_v5  ;;  %1296 = vpow2.f32 %v951_v3  ;;  %v1079_v8 = vpop.f32.mrb[12].mxu0 }
 0x157   :  { %v1281_v9 = vpop.eup %1280  ;;  %v372_v10 = vadd.f32 1.0, %v1279_v6  ;;  %1298 = vpow2.f32 %v949_v4  ;;  %v1692_v11 = vadd.f32 %v1079_v8, %v1641_v24  ;;  %v305_v12 = vpop.f32.mrb[13].mxu0 }
 0x158   :  { %v1283_v13 = vpop.eup %1282  ;;  %1300 = vrcp.f32 %v374_v7  ;;  %v375_v14 = vadd.f32 1.0, %v1281_v9  ;;  %v1695_v15 = vadd.f32 %v1641_v24, %v305_v12  ;;  %v1080_v16 = vpop.f32.mrb[14].mxu0 }
 0x159   :  { %1302 = vrcp.f32 %v372_v10  ;;  %v373_v17 = vadd.f32 1.0, %v1283_v13  ;;  %v954_v18 = vmul.f32 -1.442695, %v1692_v11  ;;  %v1699_v19 = vadd.f32 %v1080_v16, %v1641_v24  ;;  %v308_v20 = vpop.f32.mrb[15].mxu0 }
 0x15a   :  { %v1285_v21 = vpop.eup %1284  ;;  %1304 = vrcp.f32 %v375_v14  ;;  %v952_v22 = vmul.f32 -1.442695, %v1695_v15  ;;  %v1703_v23 = vadd.f32 %v1641_v24, %v308_v20 }
 0x15b   :  { %v1287_v25 = vpop.eup %1286  ;;  %1306 = vrcp.f32 %v373_v17  ;;  %v955_v27 = vmul.f32 -1.442695, %v1699_v19  ;;  %v418_v33 = vmul.f32 %v1285_v21, %v1644_v26  ;;  %v1524_v21 = vmov 0.0  }
 0x15c   :  { %v1289_v29 = vpop.eup %1288  ;;  %1308 = vpow2.f32 %v954_v18  ;;  %v953_v30 = vmul.f32 -1.442695, %v1703_v23  ;;  %v416_v37 = vmul.f32 %v1287_v25, %v1647_v28  ;;  %1145 = vmatprep.mubr.msk.f32.mxu0 %vm1523_vm0, %v1524_v21 }
 0x15d   :  { %v1291_v32 = vpop.eup %1290  ;;  %v419_v35 = vmul.f32 %v1289_v29, %v1651_v31  ;;  %1310 = vpow2.f32 %v952_v22  ;;  %v813_v22 = vld [vmem:[#allocation9 + $0x8] sm:$0xff] }
 0x15e   :  { %v1293_v36 = vpop.eup %1292  ;;  %1312 = vpow2.f32 %v955_v27  ;;  %v417_v24 = vmul.f32 %v1291_v32, %v1655_v34  ;;  %v816_v27 = vld [vmem:[#allocation9 + $0x20] sm:$0xff]  ;;  %v817_v29 = vld [vmem:[#allocation9 + $0x28] sm:$0xff]  ;;  %v818_v32 = vld [vmem:[#allocation9 + $0x30] sm:$0xff] }
 0x15f   :  { %v1295_v39 = vpop.eup %1294  ;;  %v378_v41 = vadd.f32 1.0, %v1293_v36  ;;  %1314 = vpow2.f32 %v953_v30  ;;  %v433_v42 = vpack.c.bf16 %v419_v35, %v418_v33  ;;  %v1214_v30 = vpack.c.bf16 %v817_v29, %v816_v27  ;;  %v819_v33 = vld [vmem:[#allocation9 + $0x38] sm:$0xff]  ;;  %v820_v36 = vld [vmem:[#allocation9 + $0x40] sm:$0xff] }
 0x160   :  { %v1297_v44 = vpop.eup %1296  ;;  %v376_v45 = vadd.f32 1.0, %v1295_v39  ;;  %v432_v47 = vpack.c.bf16 %v417_v24, %v416_v37  ;;  %v1217_v35 = vpack.c.bf16 %v819_v33, %v818_v32  ;;  %v821_v37 = vld [vmem:[#allocation9 + $0x48] sm:$0xff]  ;;  %v822_v39 = vld [vmem:[#allocation9 + $0x50] sm:$0xff] }
 0x161   :  { %v1299_v48 = vpop.eup %1298  ;;  %1316 = vrcp.f32 %v378_v41  ;;  %v379_v49 = vadd.f32 1.0, %v1297_v44  ;;  %v1220_v24 = vpack.c.bf16 %v821_v37, %v820_v36  ;;  %v823_v41 = vld [vmem:[#allocation9 + $0x58] sm:$0xff]  ;;  %v824_v44 = vld [vmem:[#allocation9 + $0x60] sm:$0xff] }
 0x162   :  { %v1301_v26 = vpop.eup %1300  ;;  %1318 = vrcp.f32 %v376_v45  ;;  %v377_v31 = vadd.f32 1.0, %v1299_v48  ;;  %1097 = vmatprep.mubr.bf16.mxu1 %v432_v47  ;;  %v825_v45 = vld [vmem:[#allocation9 + $0x68] sm:$0xff]  ;;  %v826_v48 = vld [vmem:[#allocation9 + $0x70] sm:$0xff] }
 0x163   :  { %v1303_v50 = vpop.eup %1302  ;;  %1320 = vrcp.f32 %v379_v49  ;;  %1098 = vmatmul.mubr.bf16.vlgmr.msra.gmra.mrb[0].mxu1 %v433_v42  ;;  %v422_v51 = vmul.f32 %v1301_v26, %v1660_v38  ;;  %v1223_v42 = vpack.c.bf16 %v823_v41, %v822_v39  ;;  %v1226_v47 = vpack.c.bf16 %v825_v45, %v824_v44  ;;  %v827_v49 = vld [vmem:[#allocation9 + $0x78] sm:$0xff] }
 0x164   :  { %v1305_v28 = vpop.eup %1304  ;;  %1322 = vrcp.f32 %v377_v31  ;;  %v420_v54 = vmul.f32 %v1303_v50, %v1663_v40  ;;  %v1229_v26 = vpack.c.bf16 %v827_v49, %v826_v48  ;;  %v1735_v31 = vld [vmem:[%s1843_s4] ss:$0 sm:$0xff] }
 0x165   :  { %v1307_v34 = vpop.eup %1306  ;;  %v423_v52 = vmul.f32 %v1305_v28, %v1667_v43 }
 0x166   :  { %v1309_v53 = vpop.eup %1308  ;;  %v421_v56 = vmul.f32 %v1307_v34, %v1671_v46 }
 0x167   :  { %v1311_v57 = vpop.eup %1310  ;;  %v382_v58 = vadd.f32 1.0, %v1309_v53  ;;  %v435_v60 = vpack.c.bf16 %v423_v52, %v422_v51 }
 0x168   :  { %v1313_v61 = vpop.eup %1312  ;;  %v380_v62 = vadd.f32 1.0, %v1311_v57  ;;  %v434_v0 = vpack.c.bf16 %v421_v56, %v420_v54 }
 0x169   :  { %v1315_v1 = vpop.eup %1314  ;;  %1324 = vrcp.f32 %v382_v58  ;;  %v383_v3 = vadd.f32 1.0, %v1313_v61 }
 0x16a   :  { %1326 = vrcp.f32 %v380_v62  ;;  %v381_v4 = vadd.f32 1.0, %v1315_v1  ;;  %1101 = vmatprep.mubr.bf16.mxu1 %v434_v0 }
 0x16b   :  { %v1317_v38 = vpop.eup %1316  ;;  %1328 = vrcp.f32 %v383_v3  ;;  %1102 = vmatmul.mubr.bf16.gmra.mrb[4].mxu1 %v435_v60 }
 0x16c   :  { %v1319_v43 = vpop.eup %1318  ;;  %1330 = vrcp.f32 %v381_v4  ;;  %v426_v46 = vmul.f32 %v1317_v38, %v1676_v55 }
 0x16d   :  { %v1321_v40 = vpop.eup %1320  ;;  %v424_v7 = vmul.f32 %v1319_v43, %v1679_v59 }
 0x16e   :  { %v1323_v5 = vpop.eup %1322  ;;  %v427_v6 = vmul.f32 %v1321_v40, %v1683_v63 }
 0x16f   :  { %v425_v8 = vmul.f32 %v1323_v5, %v1687_v2  ;;  %v1522_v2 = vmov 0.0|0.0  }
 0x170   :  { %v437_v9 = vpack.c.bf16 %v427_v6, %v426_v46  ;;  %1183 = vmatprep.subr.bf16.mxu0 %v1522_v2  ;;  %1207 = vmatprep.subr.bf16.mxu1 %v1522_v2 }
 0x171   :  { %v436_v10 = vpack.c.bf16 %v425_v8, %v424_v7 }
 0x173   :  { %v1325_v12 = vpop.eup %1324  ;;  %1105 = vmatprep.mubr.bf16.mxu1 %v436_v10 }
 0x174   :  { %v1327_v13 = vpop.eup %1326  ;;  %1106 = vmatmul.mubr.bf16.gmra.mrb[8].mxu1 %v437_v9  ;;  %v430_v17 = vmul.f32 %v1325_v12, %v1692_v11  ;;  %v812_v11 = vld [vmem:[#allocation9] sm:$0xff] }
 0x175   :  { %v1329_v14 = vpop.eup %1328  ;;  %v428_v55 = vmul.f32 %v1327_v13, %v1695_v15  ;;  %v1208_v25 = vpack.c.bf16 %v813_v22, %v812_v11  ;;  %v815_v15 = vld [vmem:[#allocation9 + $0x18] sm:$0xff] }
 0x176   :  { %v1331_v16 = vpop.eup %1330  ;;  %v431_v18 = vmul.f32 %v1329_v14, %v1699_v19  ;;  %v814_v19 = vld [vmem:[#allocation9 + $0x10] sm:$0xff] }
 0x177   :  { %v429_v63 = vmul.f32 %v1331_v16, %v1703_v23  ;;  %1209 = vmatpush3.bf16.msra.mxu1 %v1208_v25  ;;  %v1211_v23 = vpack.c.bf16 %v815_v15, %v814_v19 }
 0x178   :  { %v439_v20 = vpack.c.bf16 %v431_v18, %v430_v17  ;;  %1210 = vmatprep.subr.bf16.mxu1 %v1522_v2 }
 0x179   :  { %v438_v59 = vpack.c.bf16 %v429_v63, %v428_v55 }
 0x17b   :  { %1109 = vmatprep.mubr.bf16.mxu1 %v438_v59  ;;  %1212 = vmatpush3.bf16.msra.mxu1 %v1211_v23 }
 0x17c   :  { %1110 = vmatmul.mubr.bf16.gmra.mrb[12].mxu1 %v439_v20  ;;  %1213 = vmatprep.subr.bf16.mxu1 %v1522_v2 }
 0x17d   :  { %1180 = vmatprep.mubr.msk.f32.mxu1 %vm1523_vm0, %v1524_v21 }
 0x17f   :  { %1215 = vmatpush3.bf16.msra.mxu1 %v1214_v30 }
 0x180   :  { %1216 = vmatprep.subr.bf16.mxu1 %v1522_v2 }
 0x183   :  { %1218 = vmatpush3.bf16.msra.mxu1 %v1217_v35 }
 0x184   :  { %1219 = vmatprep.subr.bf16.mxu1 %v1522_v2 }
 0x187   :  { %1221 = vmatpush3.bf16.msra.mxu1 %v1220_v24 }
 0x188   :  { %1222 = vmatprep.subr.bf16.mxu1 %v1522_v2 }
 0x18b   :  { %1224 = vmatpush3.bf16.msra.mxu1 %v1223_v42 }
 0x18c   :  { %1225 = vmatprep.subr.bf16.mxu1 %v1522_v2 }
 0x18f   :  { %1227 = vmatpush3.bf16.msra.mxu1 %v1226_v47 }
 0x190   :  { %1228 = vmatprep.subr.bf16.mxu1 %v1522_v2 }
 0x193   :  { %1230 = vmatpush3.bf16.msra.mxu1 %v1229_v26 }
 0x236   :  { %v1099_v50 = vpop.f32.mrb[0].mxu1 }
 0x237   :  { %v1738_v28 = vadd.f32 %v1099_v50, %v1735_v31  ;;  %v545_v34 = vpop.f32.mrb[1].mxu1 }
 0x238   :  { %v1741_v51 = vadd.f32 %v1735_v31, %v545_v34  ;;  %v1100_v52 = vpop.f32.mrb[2].mxu1 }
 0x239   :  { %v967_v53 = vmul.f32 -1.442695, %v1738_v28  ;;  %v1745_v54 = vadd.f32 %v1100_v52, %v1735_v31  ;;  %v548_v56 = vpop.f32.mrb[3].mxu1 }
 0x23a   :  { %v965_v57 = vmul.f32 -1.442695, %v1741_v51  ;;  %v1749_v58 = vadd.f32 %v1735_v31, %v548_v56 }
 0x23b   :  { %1332 = vpow2.f32 %v967_v53  ;;  %v968_v60 = vmul.f32 -1.442695, %v1745_v54 }
 0x23c   :  { %1334 = vpow2.f32 %v965_v57  ;;  %v966_v61 = vmul.f32 -1.442695, %v1749_v58 }
 0x23d   :  { %1336 = vpow2.f32 %v968_v60 }
 0x23e   :  { %1338 = vpow2.f32 %v966_v61  ;;  %v1103_v62 = vpop.f32.mrb[4].mxu1 }
 0x23f   :  { %v1754_v0 = vadd.f32 %v1103_v62, %v1735_v31  ;;  %v561_v1 = vpop.f32.mrb[5].mxu1 }
 0x240   :  { %v1757_v3 = vadd.f32 %v1735_v31, %v561_v1  ;;  %v1104_v4 = vpop.f32.mrb[6].mxu1 }
 0x241   :  { %v971_v38 = vmul.f32 -1.442695, %v1754_v0  ;;  %v1761_v43 = vadd.f32 %v1104_v4, %v1735_v31  ;;  %v564_v40 = vpop.f32.mrb[7].mxu1 }
 0x242   :  { %v969_v5 = vmul.f32 -1.442695, %v1757_v3  ;;  %v1765_v46 = vadd.f32 %v1735_v31, %v564_v40 }
 0x243   :  { %1340 = vpow2.f32 %v971_v38  ;;  %v972_v6 = vmul.f32 -1.442695, %v1761_v43 }
 0x244   :  { %1342 = vpow2.f32 %v969_v5  ;;  %v970_v7 = vmul.f32 -1.442695, %v1765_v46 }
 0x245   :  { %v1333_v8 = vpop.eup %1332  ;;  %1344 = vpow2.f32 %v972_v6 }
 0x246   :  { %v1335_v9 = vpop.eup %1334  ;;  %v658_v10 = vadd.f32 1.0, %v1333_v8  ;;  %1346 = vpow2.f32 %v970_v7 }
 0x247   :  { %v1337_v12 = vpop.eup %1336  ;;  %v656_v13 = vadd.f32 1.0, %v1335_v9  ;;  %v1107_v14 = vpop.f32.mrb[8].mxu1 }
 0x248   :  { %v1339_v16 = vpop.eup %1338  ;;  %1348 = vrcp.f32 %v658_v10  ;;  %v659_v17 = vadd.f32 1.0, %v1337_v12  ;;  %v1770_v18 = vadd.f32 %v1107_v14, %v1735_v31  ;;  %v577_v55 = vpop.f32.mrb[9].mxu1 }
 0x249   :  { %1350 = vrcp.f32 %v656_v13  ;;  %v657_v63 = vadd.f32 1.0, %v1339_v16  ;;  %v1773_v20 = vadd.f32 %v1735_v31, %v577_v55  ;;  %v1108_v59 = vpop.f32.mrb[10].mxu1 }
 0x24a   :  { %1352 = vrcp.f32 %v659_v17  ;;  %v975_v21 = vmul.f32 -1.442695, %v1770_v18  ;;  %v1777_v11 = vadd.f32 %v1108_v59, %v1735_v31  ;;  %v580_v22 = vpop.f32.mrb[11].mxu1 }
 0x24b   :  { %1354 = vrcp.f32 %v657_v63  ;;  %v973_v19 = vmul.f32 -1.442695, %v1773_v20  ;;  %v1781_v25 = vadd.f32 %v1735_v31, %v580_v22 }
 0x24c   :  { %1356 = vpow2.f32 %v975_v21  ;;  %v976_v15 = vmul.f32 -1.442695, %v1777_v11 }
 0x24d   :  { %v1341_v23 = vpop.eup %1340  ;;  %1358 = vpow2.f32 %v973_v19  ;;  %v974_v27 = vmul.f32 -1.442695, %v1781_v25 }
 0x24e   :  { %v1343_v29 = vpop.eup %1342  ;;  %v662_v30 = vadd.f32 1.0, %v1341_v23  ;;  %1360 = vpow2.f32 %v976_v15 }
 0x24f   :  { %v1345_v32 = vpop.eup %1344  ;;  %v660_v33 = vadd.f32 1.0, %v1343_v29  ;;  %1362 = vpow2.f32 %v974_v27  ;;  %v1111_v35 = vpop.f32.mrb[12].mxu1 }
 0x250   :  { %v1347_v36 = vpop.eup %1346  ;;  %1364 = vrcp.f32 %v662_v30  ;;  %v663_v37 = vadd.f32 1.0, %v1345_v32  ;;  %v1786_v24 = vadd.f32 %v1111_v35, %v1735_v31  ;;  %v593_v39 = vpop.f32.mrb[13].mxu1 }
 0x251   :  { %1366 = vrcp.f32 %v660_v33  ;;  %v661_v41 = vadd.f32 1.0, %v1347_v36  ;;  %v1789_v42 = vadd.f32 %v1735_v31, %v593_v39  ;;  %v1112_v44 = vpop.f32.mrb[14].mxu1 }
 0x252   :  { %v1349_v45 = vpop.eup %1348  ;;  %1368 = vrcp.f32 %v663_v37  ;;  %v979_v47 = vmul.f32 -1.442695, %v1786_v24  ;;  %v1793_v48 = vadd.f32 %v1112_v44, %v1735_v31  ;;  %v596_v49 = vpop.f32.mrb[15].mxu1 }
 0x253   :  { %v1351_v26 = vpop.eup %1350  ;;  %1370 = vrcp.f32 %v661_v41  ;;  %v977_v50 = vmul.f32 -1.442695, %v1789_v42  ;;  %v1797_v34 = vadd.f32 %v1735_v31, %v596_v49  ;;  %v706_v57 = vmul.f32 %v1349_v45, %v1738_v28 }
 0x254   :  { %v1353_v52 = vpop.eup %1352  ;;  %1372 = vpow2.f32 %v979_v47  ;;  %v980_v53 = vmul.f32 -1.442695, %v1793_v48  ;;  %v704_v1 = vmul.f32 %v1351_v26, %v1741_v51 }
 0x255   :  { %v1355_v56 = vpop.eup %1354  ;;  %v707_v60 = vmul.f32 %v1353_v52, %v1745_v54  ;;  %1374 = vpow2.f32 %v977_v50  ;;  %v978_v61 = vmul.f32 -1.442695, %v1797_v34 }
 0x256   :  { %v1357_v62 = vpop.eup %1356  ;;  %v705_v4 = vmul.f32 %v1355_v56, %v1749_v58  ;;  %1376 = vpow2.f32 %v980_v53 }
 0x257   :  { %v1359_v31 = vpop.eup %1358  ;;  %v1187_v38 = vpack.c.bf16 %v707_v60, %v706_v57  ;;  %v666_v40 = vadd.f32 1.0, %v1357_v62  ;;  %1378 = vpow2.f32 %v978_v61 }
 0x258   :  { %v1361_v5 = vpop.eup %1360  ;;  %v1184_v6 = vpack.c.bf16 %v705_v4, %v704_v1  ;;  %v664_v7 = vadd.f32 1.0, %v1359_v31 }
 0x259   :  { %v1363_v8 = vpop.eup %1362  ;;  %1380 = vrcp.f32 %v666_v40  ;;  %v667_v28 = vadd.f32 1.0, %v1361_v5 }
 0x25a   :  { %v1365_v54 = vpop.eup %1364  ;;  %1382 = vrcp.f32 %v664_v7  ;;  %v665_v9 = vadd.f32 1.0, %v1363_v8  ;;  %1185 = vmatpush3.bf16.msra.mxu0 %v1184_v6 }
 0x25b   :  { %v1367_v10 = vpop.eup %1366  ;;  %1384 = vrcp.f32 %v667_v28  ;;  %1186 = vmatprep.subr.bf16.mxu0 %v1522_v2  ;;  %v710_v12 = vmul.f32 %v1365_v54, %v1754_v0 }
 0x25c   :  { %v1369_v51 = vpop.eup %1368  ;;  %1386 = vrcp.f32 %v665_v9  ;;  %v708_v16 = vmul.f32 %v1367_v10, %v1757_v3 }
 0x25d   :  { %v1371_v58 = vpop.eup %1370  ;;  %v711_v13 = vmul.f32 %v1369_v51, %v1761_v43 }
 0x25e   :  { %v1373_v14 = vpop.eup %1372  ;;  %v709_v17 = vmul.f32 %v1371_v58, %v1765_v46  ;;  %1188 = vmatpush3.bf16.msra.mxu0 %v1187_v38  ;;  %v721_v46 = vlaneseq }
 0x25f   :  { %v1375_v55 = vpop.eup %1374  ;;  %v1193_v63 = vpack.c.bf16 %v711_v13, %v710_v12  ;;  %v670_v59 = vadd.f32 1.0, %v1373_v14  ;;  %1189 = vmatprep.subr.bf16.mxu0 %v1522_v2 }
 0x260   :  { %v1377_v21 = vpop.eup %1376  ;;  %v1190_v22 = vpack.c.bf16 %v709_v17, %v708_v16  ;;  %v668_v19 = vadd.f32 1.0, %v1375_v55  ;;  %v726_v37 = vshrl.u32 %v721_v46, 7  ;;  %v722_v50 = vand.u32 127, %v721_v46 }
 0x261   :  { %v1379_v15 = vpop.eup %1378  ;;  %1388 = vrcp.f32 %v670_v59  ;;  %v671_v23 = vadd.f32 1.0, %v1377_v21 }
 0x262   :  { %1390 = vrcp.f32 %v668_v19  ;;  %v669_v0 = vadd.f32 1.0, %v1379_v15  ;;  %1191 = vmatpush3.bf16.msra.mxu0 %v1190_v22  ;;  %v727_v45 = vmul.u32 64, %v726_v37 }
 0x263   :  { %v1381_v43 = vpop.eup %1380  ;;  %1392 = vrcp.f32 %v671_v23  ;;  %1192 = vmatprep.subr.bf16.mxu0 %v1522_v2 }
 0x264   :  { %v1383_v3 = vpop.eup %1382  ;;  %1394 = vrcp.f32 %v669_v0  ;;  %v714_v30 = vmul.f32 %v1381_v43, %v1770_v18  ;;  %v729_v52 = vadd.s32 64, %v727_v45  ;;  %vm728_vm1 = vcmp.ge.s32.totalorder %v722_v50, %v727_v45 }
 0x265   :  { %v1385_v27 = vpop.eup %1384  ;;  %v712_v33 = vmul.f32 %v1383_v3, %v1773_v20 }
 0x266   :  { %v1387_v29 = vpop.eup %1386  ;;  %v715_v32 = vmul.f32 %v1385_v27, %v1777_v11  ;;  %1194 = vmatpush3.bf16.msra.mxu0 %v1193_v63  ;;  %vm730_vm2 = vcmp.lt.s32.totalorder %v722_v50, %v729_v52 }
 0x267   :  { %v713_v35 = vmul.f32 %v1387_v29, %v1781_v25  ;;  %1195 = vmatprep.subr.bf16.mxu0 %v1522_v2  ;;  %vm731_vm3 = vmand %vm728_vm1, %vm730_vm2 }
 0x268   :  { %v1199_v36 = vpack.c.bf16 %v715_v32, %v714_v30 }
 0x269   :  { %v1196_v39 = vpack.c.bf16 %v713_v35, %v712_v33 }
 0x26b   :  { %v1389_v41 = vpop.eup %1388  ;;  %1197 = vmatpush3.bf16.msra.mxu0 %v1196_v39 }
 0x26c   :  { %v1391_v44 = vpop.eup %1390  ;;  %1198 = vmatprep.subr.bf16.mxu0 %v1522_v2  ;;  %v718_v11 = vmul.f32 %v1389_v41, %v1786_v24  ;;  %v1525_v24 = vmov 0.015625  }
 0x26d   :  { %v1393_v47 = vpop.eup %1392  ;;  %v716_v20 = vmul.f32 %v1391_v44, %v1789_v42 }
 0x26e   :  { %v1395_v18 = vpop.eup %1394  ;;  %v719_v49 = vmul.f32 %v1393_v47, %v1793_v48 }
 0x26f   :  { %v717_v25 = vmul.f32 %v1395_v18, %v1797_v34  ;;  %1200 = vmatpush3.bf16.msra.mxu0 %v1199_v36  ;;  %v982_v34 = vld [vmem:[%s1845_s6] ss:$0 sm:$0xff] }
 0x270   :  { %v1205_v26 = vpack.c.bf16 %v719_v49, %v718_v11  ;;  %1201 = vmatprep.subr.bf16.mxu0 %v1522_v2 }
 0x271   :  { %v1202_v53 = vpack.c.bf16 %v717_v25, %v716_v20 }
 0x273   :  { %1203 = vmatpush3.bf16.msra.mxu0 %v1202_v53 }
 0x274   :  { %1204 = vmatprep.subr.bf16.mxu0 %v1522_v2 }
 0x277   :  { %1206 = vmatpush3.bf16.msra.mxu0 %v1205_v26 }
 0x27a   :  { %1146 = vmatmul.mubr.msk.f32.vlgmr.msra.gmra.mrb[16].mxu0 %vm731_vm3, %v1525_v24 }
 0x34d   :  { %v802_v48 = vpop.f32.mrb[16].mxu0 }
 0x34e   :  { %v1147_v42 = vpop.f32.mrb[17].mxu0  ;;  %1181 = vmatmul.mubr.f32.vlgmr.msra.gmra.mrb[16].mxu1 %v802_v48 }
 0x421   :  { %v901_v56 = vpop.f32.mrb[16].mxu1 }
 0x422   :  { %v902_v57 = vadd.f32 %v982_v34, %v901_v56  ;;  %v1182_v60 = vpop.f32.mrb[17].mxu1 }
 0x424   :  { %905 = vst [vmem:[#allocation11] sm:$0xff] %v902_v57 }
 0x425   :  { %1495 = shalt.err (!%p1492_p8)
}
 0x426   :  { %s1496_s12 = scalar_lea.hbm %s1846_s7, 128 }
 0x427   :  { %p1497_p9 = scmp.ne.s32.totalorder %s1846_s7, %s1496_s12  ;;  %p1500_p10 = scmp.lt.u32.totalorder %s1496_s12, %s1846_s7 }
 0x429   :  { %p1502_p11 = pnand %p1500_p10, %p1497_p9 }
 0x42b   :  { %1505 = shalt.err (!%p1502_p11)
}
 0x42c   :  { %915 = dma.vmem_to_hbm [thread:$0]  %s913_s8, 128, %s1846_s7, [#allocation5]  }
 0x42d   :  { %1512 = dma.done.wait [#allocation5], 128  }
 0x42e   :  { %1513 = vsyncadd [#allocation5], 4294967168 }
 0x42f   :  { %919 = vsyncpa [#allocation4], 1 }
 0x430   :  { %920 = vsyncpa [#allocation7], 1 }
 0x431   :  { %921 = vsyncpa [#allocation10], 1 }
 0x432   :  { %922 = vsyncpa [#allocation5], 1 }

</bundles_post_ra>
